<compile_context>
chip_gen: v7x
topology: tpu7x:2x2x1
jax: 0.10.0
libtpu: 0.0.40
codegen_flags: <defaults>
</compile_context>

<pallas_src>
import functools
import math

import jax
import jax.numpy as jnp
from jax import lax
from jax.experimental import pallas as pl
from jax.experimental.pallas import tpu as pltpu

EPS = 1e-5
NUM_GROUPS = 16


def _default_bf16_softmax():
    """bf16 exp on the (TQ,TK) score tile only where the VPU/EUP support bf16."""
    try:
        kind = jax.devices()[0].device_kind.lower()
        if "v5 lite" in kind or "v5e" in kind or "v5litepod" in kind:
            return False  # v5e has no bf16 VPU/EUP
        return True
    except Exception:
        return True


# ---------------------------------------------------------------------------
# Pass 1: GroupNorm statistics -> per-(batch, channel) affine (scale, shift)
# ---------------------------------------------------------------------------
def _gn_stats_kernel(x_ref, g_ref, gamma_ref, beta_ref,
                     scale_ref, shift_ref,
                     sum_scr, sq_scr, *, n_per_group):
    """Computes scale/shift so that GroupNorm(x) == x * scale + shift."""
    si = pl.program_id(1)

    @pl.when(si == 0)
    def _():
        sum_scr[...] = jnp.zeros_like(sum_scr)
        sq_scr[...] = jnp.zeros_like(sq_scr)

    x = x_ref[0]                                          # (TS, c) f32
    sum_scr[...] += jnp.sum(x, axis=0, keepdims=True)     # (1, c)
    sq_scr[...] += jnp.sum(x * x, axis=0, keepdims=True)  # (1, c)

    @pl.when(si == pl.num_programs(1) - 1)
    def _():
        G = g_ref[...]                                    # (c, ng) one-hot
        inv_n = 1.0 / n_per_group
        gsum = jnp.dot(sum_scr[...], G, preferred_element_type=jnp.float32)
        gsq = jnp.dot(sq_scr[...], G, preferred_element_type=jnp.float32)
        mean_g = gsum * inv_n                             # (1, ng)
        var_g = gsq * inv_n - mean_g * mean_g             # biased var (PyTorch GN)
        inv_g = lax.rsqrt(var_g + EPS)
        # Broadcast group stats back to channels: contract last dims of
        # (1, ng) with (c, ng) -- no in-kernel transpose.
        dn = (((1,), (1,)), ((), ()))
        mean_c = lax.dot_general(mean_g, G, dn, preferred_element_type=jnp.float32)
        inv_c = lax.dot_general(inv_g, G, dn, preferred_element_type=jnp.float32)
        sc = gamma_ref[...] * inv_c                       # (1, c)
        scale_ref[0] = sc
        shift_ref[0] = beta_ref[...] - mean_c * sc


# ---------------------------------------------------------------------------
# Pass 2: fused GN-apply + qkv + flash attention (VMEM K/V cache) + proj + res
# ---------------------------------------------------------------------------
def _flash_attn_block_kernel(
    xq_ref,     # (1, TQ, c) f32 : query-row tile of x (also the residual)
    xk_ref,     # (1, TK, c) f32 : key/value-row tile of x (only read if qi==0)
    scale_ref,  # (1, 1, c)  f32 : GroupNorm scale for this batch element
    shift_ref,  # (1, 1, c)  f32 : GroupNorm shift
    wq_ref, bq_ref,   # (c, c) bf16 (1/sqrt(c) folded in), (1, c) f32
    wk_ref,           # (c, c) bf16  (key bias dropped: cancels in softmax)
    wv_ref, bv_ref,   # (c, c) bf16, (1, c) f32
    wp_ref, bp_ref,   # (c, c) bf16, (1, c) f32
    o_ref,      # (1, TQ, c) f32
    q_scr,      # (TQ, c) bf16 : q tile, computed once per q-tile
    m_scr,      # (TQ, 1) f32  : running row max
    l_scr,      # (TQ, 1) f32  : running softmax denominator
    acc_scr,    # (TQ, c) f32  : running (unnormalized) output
    k_cache,    # (nk, TK, c) bf16 : all K tiles for this batch element
    v_cache,    # (nk, TK, c) bf16 : all V tiles for this batch element
    *, bf16_softmax,
):
    qi = pl.program_id(1)
    ki = pl.program_id(2)

    @pl.when(ki == 0)
    def _():
        gn_scale = scale_ref[0]       # (1, c)
        gn_shift = shift_ref[0]       # (1, c)
        xq_n = xq_ref[0] * gn_scale + gn_shift            # (TQ, c) f32
        q = jnp.dot(xq_n.astype(jnp.bfloat16), wq_ref[...],
                    preferred_element_type=jnp.float32) + bq_ref[...]
        q_scr[...] = q.astype(jnp.bfloat16)
        m_scr[...] = jnp.full_like(m_scr, -jnp.inf)
        l_scr[...] = jnp.zeros_like(l_scr)
        acc_scr[...] = jnp.zeros_like(acc_scr)

    # K/V projection only during the first query-row sweep (qi == 0); the
    # result is cached in VMEM and reused for every later q tile, removing the
    # hw/TQ-fold recomputation and HBM re-read flagged in the review.
    @pl.when(qi == 0)
    def _():
        gn_scale = scale_ref[0]
        gn_shift = shift_ref[0]
        xk_n = (xk_ref[0] * gn_scale + gn_shift).astype(jnp.bfloat16)   # (TK, c)
        k_f = jnp.dot(xk_n, wk_ref[...], preferred_element_type=jnp.float32)
        v_f = jnp.dot(xk_n, wv_ref[...],
                      preferred_element_type=jnp.float32) + bv_ref[...]
        k_cache[ki] = k_f.astype(jnp.bfloat16)
        v_cache[ki] = v_f.astype(jnp.bfloat16)

    k = k_cache[ki]                   # (TK, c) bf16
    v = v_cache[ki]                   # (TK, c) bf16

    # Scores q @ k^T: contract the channel dims directly (no explicit .T).
    s = lax.dot_general(q_scr[...], k, (((1,), (1,)), ((), ())),
                        preferred_element_type=jnp.float32)             # (TQ, TK)

    # Online softmax update (m/l kept in f32; alpha is tiny, kept f32 too).
    m_prev = m_scr[...]
    m_new = jnp.maximum(m_prev, jnp.max(s, axis=-1, keepdims=True))
    alpha = jnp.exp(m_prev - m_new)
    if bf16_softmax:
        p = jnp.exp((s - m_new).astype(jnp.bfloat16))                   # bf16 EUP
    else:
        p = jnp.exp(s - m_new)                                          # f32 (v5e)
    l_scr[...] = alpha * l_scr[...] + jnp.sum(p, axis=-1, keepdims=True,
                                              dtype=jnp.float32)
    acc_scr[...] = alpha * acc_scr[...] + jnp.dot(
        p.astype(jnp.bfloat16), v, preferred_element_type=jnp.float32)
    m_scr[...] = m_new

    @pl.when(ki == pl.num_programs(2) - 1)
    def _():
        out = acc_scr[...] * pl.reciprocal(l_scr[...], approx=True)     # (TQ, c)
        proj = jnp.dot(out.astype(jnp.bfloat16), wp_ref[...],
                       preferred_element_type=jnp.float32) + bp_ref[...]
        o_ref[0] = xq_ref[0] + proj


# ---------------------------------------------------------------------------
# Wrapper
# ---------------------------------------------------------------------------
def attention_block_pallas(x_nchw, params, *, tq=256, tk=256, ts=512,
                           bf16_softmax=None):
    """x_nchw: (b, c, h, w) float32.  Returns (b, c, h, w) float32."""
    b, c, h, w = x_nchw.shape
    hw = h * w
    assert c % NUM_GROUPS == 0
    tq, tk, ts = min(tq, hw), min(tk, hw), min(ts, hw)
    assert hw % tq == 0 and hw % tk == 0 and hw % ts == 0, (hw, tq, tk, ts)
    nk = hw // tk

    if bf16_softmax is None:
        bf16_softmax = _default_bf16_softmax()

    # NCHW -> (b, hw, c): spatial on sublanes, channels on lanes.
    x = jnp.transpose(x_nchw.reshape(b, c, hw), (0, 2, 1)).astype(jnp.float32)

    gs = c // NUM_GROUPS
    group_ids = jnp.arange(c, dtype=jnp.int32) // gs
    G = jax.nn.one_hot(group_ids, NUM_GROUPS, dtype=jnp.float32)     # (c, ng)

    gamma = params["gamma"].reshape(1, c).astype(jnp.float32)
    beta = params["beta"].reshape(1, c).astype(jnp.float32)

    const2d = lambda *idx: (0, 0)

    # ---- pass 1: GroupNorm scale/shift per (batch, channel) ---------------
    stats_kernel = functools.partial(_gn_stats_kernel,
                                     n_per_group=float(hw * gs))
    scale, shift = pl.pallas_call(
        stats_kernel,
        out_shape=(jax.ShapeDtypeStruct((b, 1, c), jnp.float32),
                   jax.ShapeDtypeStruct((b, 1, c), jnp.float32)),
        grid_spec=pltpu.PrefetchScalarGridSpec(
            num_scalar_prefetch=0,
            grid=(b, hw // ts),
            in_specs=[
                pl.BlockSpec((1, ts, c), lambda bi, si: (bi, si, 0)),   # x
                pl.BlockSpec((c, NUM_GROUPS), const2d),                 # G
                pl.BlockSpec((1, c), const2d),                          # gamma
                pl.BlockSpec((1, c), const2d),                          # beta
            ],
            out_specs=[
                pl.BlockSpec((1, 1, c), lambda bi, si: (bi, 0, 0)),     # scale
                pl.BlockSpec((1, 1, c), lambda bi, si: (bi, 0, 0)),     # shift
            ],
            scratch_shapes=[pltpu.VMEM((1, c), jnp.float32),
                            pltpu.VMEM((1, c), jnp.float32)],
        ),
        compiler_params=pltpu.CompilerParams(
            dimension_semantics=("parallel", "arbitrary")),
    )(x, G, gamma, beta)

    # ---- weight prep: fold 1/sqrt(c) into q, drop bk, pre-cast to bf16 ----
    inv_sqrt_c = 1.0 / math.sqrt(c)
    Wqkv = params["w_qkv"].reshape(3 * c, c).astype(jnp.float32)
    bqkv = params["b_qkv"].astype(jnp.float32)
    wq = (Wqkv[:c].T * inv_sqrt_c).astype(jnp.bfloat16)        # (c, c)
    bq = (bqkv[:c] * inv_sqrt_c).reshape(1, c)
    wk = Wqkv[c:2 * c].T.astype(jnp.bfloat16)                  # bk dropped
    wv = Wqkv[2 * c:].T.astype(jnp.bfloat16)
    bv = bqkv[2 * c:].reshape(1, c)
    wp = params["w_proj"].reshape(c, c).T.astype(jnp.bfloat16)
    bp = params["b_proj"].reshape(1, c).astype(jnp.float32)

    # ---- pass 2: fused flash attention block -------------------------------
    const3d = lambda bi, qi, ki: (0, 0)
    single = dict(pipeline_mode=pl.Buffered(1))   # constants: one VMEM buffer

    # Explicit VMEM budget (K/V cache + double-buffered tiles + weights).
    vmem_est = int(
        2 * (2 * tq + tk) * c * 4              # xq/xk/out f32 tiles, 2 buffers
        + 4 * c * c * 2 + 8 * c * 4            # weights (bf16) + biases/scale/shift
        + tq * c * (2 + 4) + 2 * tq * 4        # q_scr + acc + m/l
        + 2 * hw * c * 2)                      # K/V bf16 cache
    vmem_limit = int(min(128 * 1024 * 1024, max(32 * 1024 * 1024, 2 * vmem_est)))

    flash_kernel = functools.partial(_flash_attn_block_kernel,
                                     bf16_softmax=bf16_softmax)
    out = pl.pallas_call(
        flash_kernel,
        out_shape=jax.ShapeDtypeStruct((b, hw, c), jnp.float32),
        grid_spec=pltpu.PrefetchScalarGridSpec(
            num_scalar_prefetch=0,
            grid=(b, hw // tq, hw // tk),
            in_specs=[
                pl.BlockSpec((1, tq, c), lambda bi, qi, ki: (bi, qi, 0)),   # x (q rows)
                # Key/value rows: streamed only during the qi == 0 sweep; for
                # qi > 0 the index map pins block 0 (unchanged -> no new DMA),
                # the kernel reads K/V from the VMEM cache instead.
                pl.BlockSpec((1, tk, c),
                             lambda bi, qi, ki: (bi, jnp.where(qi == 0, ki, 0), 0)),
                pl.BlockSpec((1, 1, c), lambda bi, qi, ki: (bi, 0, 0), **single),  # GN scale
                pl.BlockSpec((1, 1, c), lambda bi, qi, ki: (bi, 0, 0), **single),  # GN shift
                pl.BlockSpec((c, c), const3d, **single),                           # wq
                pl.BlockSpec((1, c), const3d, **single),                           # bq
                pl.BlockSpec((c, c), const3d, **single),                           # wk
                pl.BlockSpec((c, c), const3d, **single),                           # wv
                pl.BlockSpec((1, c), const3d, **single),                           # bv
                pl.BlockSpec((c, c), const3d, **single),                           # wp
                pl.BlockSpec((1, c), const3d, **single),                           # bp
            ],
            out_specs=pl.BlockSpec((1, tq, c), lambda bi, qi, ki: (bi, qi, 0)),
            scratch_shapes=[
                pltpu.VMEM((tq, c), jnp.bfloat16),      # q tile
                pltpu.VMEM((tq, 1), jnp.float32),       # running max m
                pltpu.VMEM((tq, 1), jnp.float32),       # running denom l
                pltpu.VMEM((tq, c), jnp.float32),       # output accumulator
                pltpu.VMEM((nk, tk, c), jnp.bfloat16),  # K cache (whole hw)
                pltpu.VMEM((nk, tk, c), jnp.bfloat16),  # V cache (whole hw)
            ],
        ),
        compiler_params=pltpu.CompilerParams(
            # qi/ki must run in order on a core so the K/V cache filled during
            # the qi == 0 sweep is valid for qi > 0; only batch is parallel.
            dimension_semantics=("parallel", "arbitrary", "arbitrary"),
            vmem_limit_bytes=vmem_limit),
    )(x, x, scale, shift, wq, bq, wk, wv, bv, wp, bp)

    # (b, hw, c) -> NCHW
    return jnp.transpose(out, (0, 2, 1)).reshape(b, c, h, w)


# ---------------------------------------------------------------------------
# Pure-JAX reference (replicates the PyTorch forward, NCHW, all f32)
# ---------------------------------------------------------------------------
def attention_block_ref(x, params):
    b, c, h, w = x.shape
    gs = c // NUM_GROUPS
    xg = x.reshape(b, NUM_GROUPS, gs, h, w)
    mean = xg.mean(axis=(2, 3, 4), keepdims=True)
    var = xg.var(axis=(2, 3, 4), keepdims=True)
    xn = ((xg - mean) / jnp.sqrt(var + EPS)).reshape(b, c, h, w)
    xn = xn * params["gamma"].reshape(1, c, 1, 1) + params["beta"].reshape(1, c, 1, 1)

    Wqkv = params["w_qkv"].reshape(3 * c, c)
    qkv = jnp.einsum("oc,bchw->bohw", Wqkv, xn) + params["b_qkv"].reshape(1, 3 * c, 1, 1)
    q, k, v = jnp.split(qkv, 3, axis=1)
    q = jnp.transpose(q.reshape(b, c, -1), (0, 2, 1))
    k = k.reshape(b, c, -1)
    v = jnp.transpose(v.reshape(b, c, -1), (0, 2, 1))
    attn = jax.nn.softmax(jnp.matmul(q, k) / math.sqrt(c), axis=-1)
    out = jnp.transpose(jnp.matmul(attn, v), (0, 2, 1)).reshape(b, c, h, w)
    Wp = params["w_proj"].reshape(c, c)
    proj = jnp.einsum("oc,bchw->bohw", Wp, out) + params["b_proj"].reshape(1, c, 1, 1)
    return x + proj


def init_params(key, channels):
    c = channels
    k1, k2, k3, k4 = jax.random.split(key, 4)
    # Deterministic synthetic parameters (shapes match nn.Module __init__).
    return {
        "gamma": jnp.ones((c,), jnp.float32),                        # GroupNorm weight
        "beta": jnp.zeros((c,), jnp.float32),                        # GroupNorm bias
        "w_qkv": 0.05 * jax.random.normal(k1, (3 * c, c, 1, 1), jnp.float32),
        "b_qkv": 0.02 * jax.random.normal(k2, (3 * c,), jnp.float32),
        "w_proj": 0.05 * jax.random.normal(k3, (c, c, 1, 1), jnp.float32),
        "b_proj": 0.02 * jax.random.normal(k4, (c,), jnp.float32),
    }


if __name__ == "__main__":
    key = jax.random.PRNGKey(0)
    kx, kp = jax.random.split(key)

    # channels divisible by 16 (GroupNorm groups); c=128 keeps stores lane-dense.
    # h=w=32 -> hw=1024 -> 4x4 tiles of (tq,tk)=(256,256), exercising both the
    # online-softmax accumulation and the qi>0 reuse of the VMEM K/V cache.
    b, c, h, w = 2, 128, 32, 32
    x = jax.random.normal(kx, (b, c, h, w), jnp.float32)
    params = init_params(kp, c)

    y = jax.block_until_ready(attention_block_pallas(x, params))
    y_ref = jax.block_until_ready(attention_block_ref(x, params))

    err = float(jnp.max(jnp.abs(y - y_ref)))
    assert y.shape == (b, c, h, w), y.shape
    # Tolerance accounts for bf16 MXU operands + bf16 exp on the score tile
    # (f32 accumulation everywhere; GN stats, m/l, residual kept in f32).
    assert err < 3e-2, f"max abs error {err}"
    print("KERNEL_OK")
</pallas_src>

<mosaic_0001>
module attributes {stable_mosaic.version = 11 : i64} {
  func.func @_gn_stats_kernel(%arg0: i32, %arg1: i32, %arg2: memref<1x512x128xf32, #tpu.memory_space<vmem>>, %arg3: memref<128x16xf32, #tpu.memory_space<vmem>>, %arg4: memref<1x128xf32, #tpu.memory_space<vmem>>, %arg5: memref<1x128xf32, #tpu.memory_space<vmem>>, %arg6: memref<1x1x128xf32, #tpu.memory_space<vmem>>, %arg7: memref<1x1x128xf32, #tpu.memory_space<vmem>>, %arg8: memref<1x128xf32, #tpu.memory_space<vmem>>, %arg9: memref<1x128xf32, #tpu.memory_space<vmem>>) attributes {dimension_semantics = [#tpu.dimension_semantics<parallel>, #tpu.dimension_semantics<arbitrary>], iteration_bounds = array<i64: 2, 2>, scalar_prefetch = 0 : i64, scratch_operands = 2 : i64, tpu.core_type = #tpu.core_type<tc>, window_params = [{transform_indices = @transform_0, window_bounds = array<i64: 1, 512, 128>}, {pipeline_mode = #tpu.pipeline_mode<synchronous>, transform_indices = @transform_1, window_bounds = array<i64: 128, 16>}, {pipeline_mode = #tpu.pipeline_mode<synchronous>, transform_indices = @transform_2, window_bounds = array<i64: 1, 128>}, {pipeline_mode = #tpu.pipeline_mode<synchronous>, transform_indices = @transform_3, window_bounds = array<i64: 1, 128>}, {transform_indices = @transform_4, window_bounds = array<i64: 1, 1, 128>}, {transform_indices = @transform_5, window_bounds = array<i64: 1, 1, 128>}]} {
    %c0_i32 = arith.constant 0 : i32
    %0 = arith.cmpi eq, %arg1, %c0_i32 : i32
    %1 = arith.extui %0 : i1 to i32
    %c0_i32_0 = arith.constant 0 : i32
    %2 = arith.cmpi ne, %1, %c0_i32_0 : i32
    scf.if %2 {
      %cst_13 = arith.constant 0.000000e+00 : f32
      %19 = vector.broadcast %cst_13 : f32 to vector<1x128xf32>
      %c0_14 = arith.constant 0 : index
      %c0_15 = arith.constant 0 : index
      %20 = vector.load %arg8[%c0_14, %c0_15] : memref<1x128xf32, #tpu.memory_space<vmem>>, vector<1x128xf32>
      tpu.vector_store %arg8[%c0_14, %c0_15], %19 {strides = array<i32>} : memref<1x128xf32, #tpu.memory_space<vmem>>, vector<1x128xf32>,
      %cst_16 = arith.constant 0.000000e+00 : f32
      %21 = vector.broadcast %cst_16 : f32 to vector<1x128xf32>
      %c0_17 = arith.constant 0 : index
      %c0_18 = arith.constant 0 : index
      %22 = vector.load %arg9[%c0_17, %c0_18] : memref<1x128xf32, #tpu.memory_space<vmem>>, vector<1x128xf32>
      tpu.vector_store %arg9[%c0_17, %c0_18], %21 {strides = array<i32>} : memref<1x128xf32, #tpu.memory_space<vmem>>, vector<1x128xf32>,
    } else {
    }
    %c0 = arith.constant 0 : index
    %c0_1 = arith.constant 0 : index
    %c0_2 = arith.constant 0 : index
    %3 = vector.load %arg2[%c0, %c0_1, %c0_2] : memref<1x512x128xf32, #tpu.memory_space<vmem>>, vector<1x512x128xf32>
    %4 = vector.shape_cast %3 : vector<1x512x128xf32> to vector<512x128xf32>
    %c0_3 = arith.constant 0 : index
    %c0_4 = arith.constant 0 : index
    %5 = vector.load %arg8[%c0_3, %c0_4] : memref<1x128xf32, #tpu.memory_space<vmem>>, vector<1x128xf32>
    %cst = arith.constant dense<0.000000e+00> : vector<128xf32>
    %6 = vector.multi_reduction <add>, %4, %cst [0] : vector<512x128xf32> to vector<128xf32>
    %7 = vector.shape_cast %6 : vector<128xf32> to vector<1x128xf32>
    %8 = arith.addf %5, %7 : vector<1x128xf32>
    %c0_5 = arith.constant 0 : index
    %c0_6 = arith.constant 0 : index
    %9 = vector.load %arg8[%c0_5, %c0_6] : memref<1x128xf32, #tpu.memory_space<vmem>>, vector<1x128xf32>
    tpu.vector_store %arg8[%c0_5, %c0_6], %8 {strides = array<i32>} : memref<1x128xf32, #tpu.memory_space<vmem>>, vector<1x128xf32>,
    %c0_7 = arith.constant 0 : index
    %c0_8 = arith.constant 0 : index
    %10 = vector.load %arg9[%c0_7, %c0_8] : memref<1x128xf32, #tpu.memory_space<vmem>>, vector<1x128xf32>
    %11 = arith.mulf %4, %4 : vector<512x128xf32>
    %cst_9 = arith.constant dense<0.000000e+00> : vector<128xf32>
    %12 = vector.multi_reduction <add>, %11, %cst_9 [0] : vector<512x128xf32> to vector<128xf32>
    %13 = vector.shape_cast %12 : vector<128xf32> to vector<1x128xf32>
    %14 = arith.addf %10, %13 : vector<1x128xf32>
    %c0_10 = arith.constant 0 : index
    %c0_11 = arith.constant 0 : index
    %15 = vector.load %arg9[%c0_10, %c0_11] : memref<1x128xf32, #tpu.memory_space<vmem>>, vector<1x128xf32>
    tpu.vector_store %arg9[%c0_10, %c0_11], %14 {strides = array<i32>} : memref<1x128xf32, #tpu.memory_space<vmem>>, vector<1x128xf32>,
    %c1_i32 = arith.constant 1 : i32
    %16 = arith.cmpi eq, %arg1, %c1_i32 : i32
    %17 = arith.extui %16 : i1 to i32
    %c0_i32_12 = arith.constant 0 : i32
    %18 = arith.cmpi ne, %17, %c0_i32_12 : i32
    scf.if %18 {
      %c0_13 = arith.constant 0 : index
      %c0_14 = arith.constant 0 : index
      %19 = vector.load %arg3[%c0_13, %c0_14] : memref<128x16xf32, #tpu.memory_space<vmem>>, vector<128x16xf32>
      %c0_15 = arith.constant 0 : index
      %c0_16 = arith.constant 0 : index
      %20 = vector.load %arg8[%c0_15, %c0_16] : memref<1x128xf32, #tpu.memory_space<vmem>>, vector<1x128xf32>
      %cst_17 = arith.constant dense<0.000000e+00> : vector<1x16xf32>
      %21 = tpu.matmul %20, %19, %cst_17 {dimension_numbers = #tpu.dot_dimension_numbers<[1], [0], [0], [1], [0, 0, 1, 1], [], []>} : vector<1x128xf32>, vector<128x16xf32>, vector<1x16xf32> -> vector<1x16xf32>
      %c0_18 = arith.constant 0 : index
      %c0_19 = arith.constant 0 : index
      %22 = vector.load %arg9[%c0_18, %c0_19] : memref<1x128xf32, #tpu.memory_space<vmem>>, vector<1x128xf32>
      %cst_20 = arith.constant dense<0.000000e+00> : vector<1x16xf32>
      %23 = tpu.matmul %22, %19, %cst_20 {dimension_numbers = #tpu.dot_dimension_numbers<[1], [0], [0], [1], [0, 0, 1, 1], [], []>} : vector<1x128xf32>, vector<128x16xf32>, vector<1x16xf32> -> vector<1x16xf32>
      %cst_21 = arith.constant 1.22070313E-4 : f32
      %24 = vector.broadcast %cst_21 : f32 to vector<1x16xf32>
      %25 = arith.mulf %21, %24 : vector<1x16xf32>
      %cst_22 = arith.constant 1.22070313E-4 : f32
      %26 = vector.broadcast %cst_22 : f32 to vector<1x16xf32>
      %27 = arith.mulf %23, %26 : vector<1x16xf32>
      %28 = arith.mulf %25, %25 : vector<1x16xf32>
      %29 = arith.subf %27, %28 : vector<1x16xf32>
      %cst_23 = arith.constant 9.99999974E-6 : f32
      %30 = vector.broadcast %cst_23 : f32 to vector<1x16xf32>
      %31 = arith.addf %29, %30 : vector<1x16xf32>
      %32 = math.rsqrt %31 : vector<1x16xf32>
      %cst_24 = arith.constant dense<0.000000e+00> : vector<1x128xf32>
      %33 = tpu.matmul %25, %19, %cst_24 {dimension_numbers = #tpu.dot_dimension_numbers<[1], [1], [0], [0], [0, 0, 1, 0], [], []>} : vector<1x16xf32>, vector<128x16xf32>, vector<1x128xf32> -> vector<1x128xf32>
      %cst_25 = arith.constant dense<0.000000e+00> : vector<1x128xf32>
      %34 = tpu.matmul %32, %19, %cst_25 {dimension_numbers = #tpu.dot_dimension_numbers<[1], [1], [0], [0], [0, 0, 1, 0], [], []>} : vector<1x16xf32>, vector<128x16xf32>, vector<1x128xf32> -> vector<1x128xf32>
      %c0_26 = arith.constant 0 : index
      %c0_27 = arith.constant 0 : index
      %35 = vector.load %arg4[%c0_26, %c0_27] : memref<1x128xf32, #tpu.memory_space<vmem>>, vector<1x128xf32>
      %36 = arith.mulf %35, %34 : vector<1x128xf32>
      %c0_28 = arith.constant 0 : index
      %c0_29 = arith.constant 0 : index
      %c0_30 = arith.constant 0 : index
      %37 = vector.load %arg6[%c0_28, %c0_29, %c0_30] : memref<1x1x128xf32, #tpu.memory_space<vmem>>, vector<1x1x128xf32>
      %38 = vector.shape_cast %37 : vector<1x1x128xf32> to vector<1x128xf32>
      %39 = vector.shape_cast %36 : vector<1x128xf32> to vector<1x1x128xf32>
      tpu.vector_store %arg6[%c0_28, %c0_29, %c0_30], %39 {strides = array<i32>} : memref<1x1x128xf32, #tpu.memory_space<vmem>>, vector<1x1x128xf32>,
      %c0_31 = arith.constant 0 : index
      %c0_32 = arith.constant 0 : index
      %40 = vector.load %arg5[%c0_31, %c0_32] : memref<1x128xf32, #tpu.memory_space<vmem>>, vector<1x128xf32>
      %41 = arith.mulf %33, %36 : vector<1x128xf32>
      %42 = arith.subf %40, %41 : vector<1x128xf32>
      %c0_33 = arith.constant 0 : index
      %c0_34 = arith.constant 0 : index
      %c0_35 = arith.constant 0 : index
      %43 = vector.load %arg7[%c0_33, %c0_34, %c0_35] : memref<1x1x128xf32, #tpu.memory_space<vmem>>, vector<1x1x128xf32>
      %44 = vector.shape_cast %43 : vector<1x1x128xf32> to vector<1x128xf32>
      %45 = vector.shape_cast %42 : vector<1x128xf32> to vector<1x1x128xf32>
      tpu.vector_store %arg7[%c0_33, %c0_34, %c0_35], %45 {strides = array<i32>} : memref<1x1x128xf32, #tpu.memory_space<vmem>>, vector<1x1x128xf32>,
    } else {
    }
    return
  }
  func.func @transform_0(%arg0: i32, %arg1: i32) -> (i32, i32, i32) {
    %c0_i32 = arith.constant 0 : i32
    %c0_i32_0 = arith.constant 0 : i32
    return %arg0, %arg1, %c0_i32 : i32, i32, i32
  }
  func.func @transform_1(%arg0: i32, %arg1: i32) -> (i32, i32) {
    %c0_i32 = arith.constant 0 : i32
    %c0_i32_0 = arith.constant 0 : i32
    %c0_i32_1 = arith.constant 0 : i32
    return %c0_i32, %c0_i32_0 : i32, i32
  }
  func.func @transform_2(%arg0: i32, %arg1: i32) -> (i32, i32) {
    %c0_i32 = arith.constant 0 : i32
    %c0_i32_0 = arith.constant 0 : i32
    %c0_i32_1 = arith.constant 0 : i32
    return %c0_i32, %c0_i32_0 : i32, i32
  }
  func.func @transform_3(%arg0: i32, %arg1: i32) -> (i32, i32) {
    %c0_i32 = arith.constant 0 : i32
    %c0_i32_0 = arith.constant 0 : i32
    %c0_i32_1 = arith.constant 0 : i32
    return %c0_i32, %c0_i32_0 : i32, i32
  }
  func.func @transform_4(%arg0: i32, %arg1: i32) -> (i32, i32, i32) {
    %c0_i32 = arith.constant 0 : i32
    %c0_i32_0 = arith.constant 0 : i32
    %c0_i32_1 = arith.constant 0 : i32
    return %arg0, %c0_i32, %c0_i32_0 : i32, i32, i32
  }
  func.func @transform_5(%arg0: i32, %arg1: i32) -> (i32, i32, i32) {
    %c0_i32 = arith.constant 0 : i32
    %c0_i32_0 = arith.constant 0 : i32
    %c0_i32_1 = arith.constant 0 : i32
    return %arg0, %c0_i32, %c0_i32_0 : i32, i32, i32
  }
}

</mosaic_0001>

<bundles_post_ra>
// kernel: tpu_custom_call.1
= control target key start
LH: loop header
LB: loop body
LE: loop exit
PB: predicated region body
PF: predicated region fallthrough
CT: control target
= control target key end

     0   :  { %s2220_s0 = inlined_call_operand.hbm [shape: f32[2,1024,128], index: 0, kind: input, shape index: {}]   ;;  %s2221_s1 = inlined_call_operand.vmem [shape: f32[128,16], index: 1, kind: input, shape index: {}]   ;;  %s2222_s2 = inlined_call_operand.vmem [shape: f32[1,128], index: 2, kind: input, shape index: {}]   ;;  %s2223_s3 = inlined_call_operand.vmem [shape: f32[1,128], index: 3, kind: input, shape index: {}]   ;;  %s2224_s4 = inlined_call_operand.hbm [shape: f32[2,1,128], index: 4, kind: output, shape index: {0}]   ;;  %s2225_s5 = inlined_call_operand.hbm [shape: f32[2,1,128], index: 5, kind: output, shape index: {1}]  }
   0x1   :  { %2231 = sst [smem:[#allocation17_spill]] %s2220_s0 }
   0x2   :  { %2232 = sst [smem:[#allocation18_spill]] %s2225_s5 }
   0x3   :  { %11 = vsyncpa [#allocation5], 0 }
   0x4   :  { %13 = vsyncpa [#allocation5 + $0x1], 0 }
   0x5   :  { %14 = vsyncpa [#allocation6], 0 }
   0x6   :  { %16 = vsyncpa [#allocation6 + $0x1], 0 }
   0x7   :  { %17 = vsyncpa [#allocation9], 0 }
   0x8   :  { %19 = vsyncpa [#allocation9 + $0x1], 0  ;;  %s1765_s18 = smov 0   ;;  %s1767_s19 = smov 0  }
   0x9   :  { %s1769_s20 = smov 0   ;;  %s1771_s21 = smov 0  }
   0xa   :  { %s1773_s22 = smov 0   ;;  %s1775_s23 = smov 0  }
   0xb   :  { %s1777_s24 = smov 0   ;;  %s1779_s25 = smov 0  }
   0xc   :  { %s1781_s26 = smov 0   ;;  %s1783_s27 = smov 0  }
   0xd   :  { %s1785_s28 = smov 0  }
   0xe LB: > { %2233 = sst [smem:[#allocation13_spill]] %s1704_s23  ;;  %s1055_s29 = sadd.s32 4294967295, %s1724_s28   ;;  %s1724_s28 = sphi %s1785_s28, %s25_s28   ;;  %s1720_s27 = sphi %s1783_s27, %s2260_s27   ;;  %s1716_s26 = sphi %s1781_s26, %s2259_s26   ;;  %s1712_s25 = sphi %s1779_s25, %s2258_s25   ;;  %s1708_s24 = sphi %s1777_s24, %s2257_s24   ;;  %s1704_s23 = sphi %s1775_s23, %s2249_s23   ;;  %s1700_s22 = sphi %s1773_s22, %s2256_s22   ;;  %s1696_s21 = sphi %s1771_s21, %s2255_s21   ;;  %s1692_s20 = sphi %s1769_s20, %s2254_s20   ;;  %s1688_s19 = sphi %s1767_s19, %s2253_s19   ;;  %s1684_s18 = sphi %s1765_s18, %s2252_s18  }
   0xf   : > { %s1056_s30 = sadd.s32 4294967294, %s1724_s28   ;;  %s34_s6 = sadd.s32 1, %s1716_s26 }
  0x10   : > { %s37_s7 = sadd.s32 1, %s1720_s27  ;;  %p35_p0 = scmp.ge.s32.totalorder %s34_s6, 2 }
  0x11   : > { %s46_s8 = sadd.s32 1, %s1704_s23  ;;  %p53_p1 = scmp.ne.s32.totalorder %s1704_s23, %s1700_s22 }
  0x12   : > { %p54_p2 = scmp.eq.s32.totalorder %s1724_s28, 0  ;;  %s2262_s6 = smov (%p35_p0, %s34_s6), 0 }
  0x13   : > { %2234 = sst [smem:[#allocation14_spill]] %s2262_s6  ;;  %s2264_s7 = smov (!%p35_p0, %s37_s7), %s1720_s27 }
  0x14   : > { %s42_s9 = ssub.s32 %s1716_s26, %s2262_s6  ;;  %p1831_p3 = por %p54_p2, %p53_p1 }
  0x15   : > { %p39_p4 = scmp.ge.s32.totalorder %s2264_s7, 2  ;;  %p59_p5 = scmp.ne.s32.totalorder %s1700_s22, %s1696_s21 }
  0x16   : > { %p60_p6 = scmp.eq.s32.totalorder %s1055_s29, 0  ;;  %s135_s11 = sadd.s32 1, %s1692_s20 }
  0x17   : > { %s2266_s7 = smov (%p39_p4, %s2264_s7), 0  ;;  %p145_p8 = scmp.ne.s32.totalorder %s1692_s20, %s1688_s19 }
  0x18   : > { %2236 = sst [smem:[#allocation15_spill]] %s2266_s7  ;;  %p1839_p7 = por %p60_p6, %p59_p5 }
  0x19   : > { %s41_s13 = ssub.s32 %s1720_s27, %s2266_s7  ;;  %p146_p9 = scmp.eq.s32.totalorder %s1055_s29, 3 }
  0x1a   : > { %s43_s14 = sor.u32 %s42_s9, %s41_s13  ;;  %p133_p10 = scmp.eq.s32.totalorder %s41_s13, 0 }
  0x1b   : > { %p44_p11 = scmp.eq.s32.totalorder %s43_s14, 0  ;;  %p1847_p12 = por %p146_p9, %p145_p8 }
  0x1c   : > { %s1852_s16 = scalar_select %p133_p10, %s1692_s20, %s135_s11  }
  0x1d   : > { %s2238_s15 = scalar_select %p1847_p12, 1, 0 }
  0x1e   : > { %s1855_s17 = scalar_select %p44_p11, %s1704_s23, %s46_s8  }
  0x1f   : > { %p151_p13 = scmp.ne.s32.totalorder %s1688_s19, %s1684_s18  ;;  %p152_p0 = scmp.eq.s32.totalorder %s1056_s30, 3 }
  0x20   : > { %2239 = sst [smem:[#allocation16_spill]] %s1855_s17  ;;  %p1442_p1 = scmp.lt.s32.totalorder %s1724_s28, 4 }
  0x21   : > { %p1860_p2 = por %p152_p0, %p151_p13  ;;  %s207_s29 = sand.u32 1, %s1704_s23  }
  0x22   : > { %s1059_s9 = sshll.u32 %s207_s29, 9  ;;  %s1060_s13 = sshll.u32 %s1716_s26, 6 }
  0x23   : > { %s2240_s21 = scalar_select %p1860_p2, 1, 0 }
  0x24   : > { %s1061_s14 = sshll.u32 %s1720_s27, 7  ;;  %s211_s7 = scalar_lea.vmem [#allocation4], %s1059_s9 }
  0x25   : > { %s220_s6 = sshll.u32 %s211_s7, 4  ;;  %s217_s5 = sadd.s32 %s1061_s14, %s1060_s13  ;;  %s1867_s6 = int_to_ptr.vmem [resolvable:$true] %s220_s6 }
  0x26   : > { %s1062_s11 = sshll.u32 %s217_s5, 7  ;;  %p1871_p4 = pnand %p1442_p1, %p1831_p3 }
  0x27   : > { %s2242_s0 = sld [smem:[#allocation17_spill]]  ;;  %s1880_s7 = scalar_lea.sflag [#allocation5], %s207_s29 }
  0x28   : > { %p1542_p3 = pneg %p1871_p4 }
  0x2d   : > { %s1878_s23 = scalar_lea.hbm %s2242_s0, %s1062_s11  ;;  %s1545_s17 = scalar_lea.hbm %s2242_s0, 32768 }
  0x2e   : > { %s1540_s9 = scalar_lea.hbm %s1878_s23, 8192  ;;  %p1546_p9 = scmp.lt.u32.totalorder %s1878_s23, %s2242_s0 }
  0x2f   : > { %p1541_p5 = scmp.ne.s32.totalorder %s1878_s23, %s1540_s9  ;;  %p1547_p10 = scmp.lt.u32.totalorder %s1545_s17, %s1540_s9 }
  0x30   : > { %p1549_p13 = scmp.lt.u32.totalorder %s1540_s9, %s1878_s23 }
  0x31   : > { %p1543_p6 = pnand %p1542_p3, %p1541_p5  ;;  %p1548_p11 = por %p1547_p10, %p1546_p9 }
  0x33   : > { %p1544_p8 = pneg %p1543_p6  ;;  %p1550_p0 = por %p1549_p13, %p1548_p11 }
  0x35   : > { %p1551_p1 = pnand %p1550_p0, %p1544_p8 }
  0x37   : > { %1554 = shalt.err (!%p1551_p1)
}
  0x38   : > { %s1555_s29 = scalar_lea.vmem %s1867_s6, 8192  ;;  %s1726_s11 = smov [#allocation4]  }
  0x39   : > { %p1556_p5 = scmp.ne.s32.totalorder %s1867_s6, %s1555_s29  ;;  %s1560_s30 = sshll.u32 %s1726_s11, 4  ;;  %s1561_s30 = int_to_ptr.vmem [resolvable:$false] %s1560_s30 }
  0x3a   : > { %s1562_s5 = scalar_lea.vmem %s1561_s30, 16384  ;;  %p1563_p12 = scmp.lt.s32.totalorder %s1867_s6, %s1561_s30 }
  0x3b   : > { %p1558_p6 = pnand %p1556_p5, %p1542_p3  ;;  %p1564_p9 = scmp.lt.s32.totalorder %s1562_s5, %s1555_s29 }
  0x3d   : > { %p1559_p2 = pneg %p1558_p6  ;;  %p1565_p10 = por %p1564_p9, %p1563_p12 }
  0x3f   : > { %p1566_p11 = pnand %p1565_p10, %p1559_p2 }
  0x41   : > { %1569 = shalt.err (!%p1566_p11)
}
  0x42   : > { %s1727_s9 = smov 128   ;;  %s1728_s10 = smov 8  }
  0x43   : > { %1434 = dma.hbm_to_vmem [thread:$0]  (!%p1871_p4), %s1878_s23, 8192, %s1867_s6, %s1880_s7, %s1727_s9, %s1727_s9, %s1728_s10  }
  0x44   : > { %p1063_p3 = scmp.ge.s32.totalorder %s1724_s28, 1  ;;  %p228_p8 = scmp.lt.s32.totalorder %s1724_s28, 5 }
  0x46   : > { %p229_p13 = pnand %p1063_p3, %p228_p8 }
  0x47   : > { %s234_s17 = sand.u32 (!%p229_p13), 1, %s1700_s22  }
  0x48   : > { %232 = sbr.rel (%p229_p13) target bundleno = 737 (0x2e1), region = 36  ;;  %s1064_s13 = sshll.u32 (!%p229_p13), %s234_s17, 9 }
  0x49   : > { %s235_s14 = scalar_lea.sflag (!%p229_p13), [#allocation5], %s234_s17  ;;  %s1911_s29 = scalar_lea.vmem (!%p229_p13), [#allocation4], %s1064_s13 }
  0x4f   : > { %1671 = dma.done.wait (%p1839_p7), %s235_s14, 8192  }
  0x50   : > { %1673 = vsyncadd (%p1839_p7), %s235_s14, 4294959104  ;;  %s1918_s11 = sand.u32 1, %s1688_s19   ;;  %p1065_p12 = scmp.ne.s32.totalorder %s1708_s24, 0 }
  0x51   : > { %s261_s23 = scalar_lea.vmem [#allocation7], %s1918_s11  ;;  %s267_s6 = scalar_lea.vmem [#allocation8], %s1918_s11  ;;  %v1729_v0 = vmov (!%p1065_p12), 0.0  }
  0x52   : > { %272 = sbr.rel (%p1065_p12) target bundleno = 89 (0x59), region = 44  ;;  %273 = vst [vmem:[#allocation2] sm:$0x1] (!%p1065_p12), %v1729_v0  ;;  %274 = vst [vmem:[#allocation3] sm:$0x1] (!%p1065_p12), %v1729_v0 }
  0x59 PF: > { %v275_v1 = vld [vmem:[%s1911_s29] sm:$0xff]  ;;  %v276_v2 = vld [vmem:[%s1911_s29 + $0x8] sm:$0xff]  ;;  %v277_v3 = vld [vmem:[%s1911_s29 + $0x10] sm:$0xff]  ;;  %p1066_p7 = scmp.ne.s32.totalorder %s1708_s24, 1 }
  0x5a   : > { %v278_v4 = vld [vmem:[%s1911_s29 + $0x18] sm:$0xff]  ;;  %v340_v5 = vadd.f32 %v276_v2, %v275_v1  ;;  %v412_v6 = vmul.f32 %v275_v1, %v275_v1  ;;  %v413_v7 = vmul.f32 %v276_v2, %v276_v2  ;;  %v414_v8 = vmul.f32 %v277_v3, %v277_v3  ;;  %v279_v9 = vld [vmem:[%s1911_s29 + $0x20] sm:$0xff]  ;;  %v280_v13 = vld [vmem:[%s1911_s29 + $0x28] sm:$0xff] }
  0x5b   : > { %v415_v11 = vmul.f32 %v278_v4, %v278_v4  ;;  %v416_v15 = vmul.f32 %v279_v9, %v279_v9  ;;  %v281_v17 = vld [vmem:[%s1911_s29 + $0x30] sm:$0xff]  ;;  %v417_v19 = vmul.f32 %v280_v13, %v280_v13  ;;  %v282_v21 = vld [vmem:[%s1911_s29 + $0x38] sm:$0xff]  ;;  %v283_v25 = vld [vmem:[%s1911_s29 + $0x40] sm:$0xff]  ;;  %vm1731_vm0 = vmmov (!%p1066_p7), 0  }
  0x5c   : > { %v341_v10 = vadd.f32 %v340_v5, %v277_v3  ;;  %v476_v12 = vadd.f32 %v413_v7, %v412_v6  ;;  %v418_v23 = vmul.f32 %v281_v17, %v281_v17  ;;  %v419_v27 = vmul.f32 %v282_v21, %v282_v21  ;;  %v284_v29 = vld [vmem:[%s1911_s29 + $0x48] sm:$0xff]  ;;  %v285_v33 = vld [vmem:[%s1911_s29 + $0x50] sm:$0xff]  ;;  %v286_v37 = vld [vmem:[%s1911_s29 + $0x58] sm:$0xff] }
  0x5d   : > { %v420_v31 = vmul.f32 %v283_v25, %v283_v25  ;;  %v421_v35 = vmul.f32 %v284_v29, %v284_v29  ;;  %v422_v39 = vmul.f32 %v285_v33, %v285_v33  ;;  %v287_v41 = vld [vmem:[%s1911_s29 + $0x60] sm:$0xff]  ;;  %v423_v43 = vmul.f32 %v286_v37, %v286_v37  ;;  %v288_v45 = vld [vmem:[%s1911_s29 + $0x68] sm:$0xff]  ;;  %v289_v49 = vld [vmem:[%s1911_s29 + $0x70] sm:$0xff] }
  0x5e   : > { %v342_v14 = vadd.f32 %v341_v10, %v278_v4  ;;  %v477_v16 = vadd.f32 %v476_v12, %v414_v8  ;;  %v424_v47 = vmul.f32 %v287_v41, %v287_v41  ;;  %v425_v51 = vmul.f32 %v288_v45, %v288_v45  ;;  %v290_v53 = vld [vmem:[%s1911_s29 + $0x78] sm:$0xff]  ;;  %v291_v57 = vld [vmem:[%s1911_s29 + $0x80] sm:$0xff]  ;;  %v292_v61 = vld [vmem:[%s1911_s29 + $0x88] sm:$0xff] }
  0x5f   : > { %v426_v55 = vmul.f32 %v289_v49, %v289_v49  ;;  %v427_v59 = vmul.f32 %v290_v53, %v290_v53  ;;  %v428_v63 = vmul.f32 %v291_v57, %v291_v57  ;;  %v293_v1 = vld [vmem:[%s1911_s29 + $0x90] sm:$0xff]  ;;  %v429_v3 = vmul.f32 %v292_v61, %v292_v61  ;;  %v294_v5 = vld [vmem:[%s1911_s29 + $0x98] sm:$0xff] }
  0x60   : > { %v343_v18 = vadd.f32 %v342_v14, %v279_v9  ;;  %v478_v20 = vadd.f32 %v477_v16, %v415_v11  ;;  %v430_v7 = vmul.f32 %v293_v1, %v293_v1  ;;  %v295_v9 = vld [vmem:[%s1911_s29 + $0xa0] sm:$0xff]  ;;  %v431_v11 = vmul.f32 %v294_v5, %v294_v5 }
  0x61   : > { %vm715_vm1 = vcmask (!%p1066_p7), 130048  }
  0x62   : > { %v344_v22 = vadd.f32 %v343_v18, %v280_v13  ;;  %v479_v24 = vadd.f32 %v478_v20, %v416_v15  ;;  %v296_v13 = vld [vmem:[%s1911_s29 + $0xa8] sm:$0xff]  ;;  %v432_v15 = vmul.f32 %v295_v9, %v295_v9  ;;  %vm2064_vm2 = vmpackc.low (!%p1066_p7), %vm715_vm1, %vm715_vm1 }
  0x64   : > { %v345_v26 = vadd.f32 %v344_v22, %v281_v17  ;;  %v480_v28 = vadd.f32 %v479_v24, %v417_v19  ;;  %v297_v17 = vld [vmem:[%s1911_s29 + $0xb0] sm:$0xff]  ;;  %v433_v19 = vmul.f32 %v296_v13, %v296_v13 }
  0x66   : > { %v346_v30 = vadd.f32 %v345_v26, %v282_v21  ;;  %v481_v32 = vadd.f32 %v480_v28, %v418_v23  ;;  %v298_v21 = vld [vmem:[%s1911_s29 + $0xb8] sm:$0xff]  ;;  %v434_v23 = vmul.f32 %v297_v17, %v297_v17 }
  0x68   : > { %v347_v34 = vadd.f32 %v346_v30, %v283_v25  ;;  %v482_v36 = vadd.f32 %v481_v32, %v419_v27  ;;  %v299_v25 = vld [vmem:[%s1911_s29 + $0xc0] sm:$0xff]  ;;  %v435_v27 = vmul.f32 %v298_v21, %v298_v21 }
  0x6a   : > { %v348_v38 = vadd.f32 %v347_v34, %v284_v29  ;;  %v483_v40 = vadd.f32 %v482_v36, %v420_v31  ;;  %v300_v29 = vld [vmem:[%s1911_s29 + $0xc8] sm:$0xff]  ;;  %v436_v31 = vmul.f32 %v299_v25, %v299_v25 }
  0x6c   : > { %v349_v42 = vadd.f32 %v348_v38, %v285_v33  ;;  %v484_v44 = vadd.f32 %v483_v40, %v421_v35  ;;  %v301_v33 = vld [vmem:[%s1911_s29 + $0xd0] sm:$0xff]  ;;  %v437_v35 = vmul.f32 %v300_v29, %v300_v29 }
  0x6e   : > { %v350_v46 = vadd.f32 %v349_v42, %v286_v37  ;;  %v485_v48 = vadd.f32 %v484_v44, %v422_v39  ;;  %v302_v37 = vld [vmem:[%s1911_s29 + $0xd8] sm:$0xff]  ;;  %v438_v39 = vmul.f32 %v301_v33, %v301_v33 }
  0x70   : > { %v351_v50 = vadd.f32 %v350_v46, %v287_v41  ;;  %v486_v52 = vadd.f32 %v485_v48, %v423_v43  ;;  %v303_v41 = vld [vmem:[%s1911_s29 + $0xe0] sm:$0xff]  ;;  %v439_v43 = vmul.f32 %v302_v37, %v302_v37 }
  0x72   : > { %v352_v54 = vadd.f32 %v351_v50, %v288_v45  ;;  %v487_v56 = vadd.f32 %v486_v52, %v424_v47  ;;  %v304_v45 = vld [vmem:[%s1911_s29 + $0xe8] sm:$0xff]  ;;  %v440_v47 = vmul.f32 %v303_v41, %v303_v41 }
  0x74   : > { %v353_v58 = vadd.f32 %v352_v54, %v289_v49  ;;  %v488_v60 = vadd.f32 %v487_v56, %v425_v51  ;;  %v305_v49 = vld [vmem:[%s1911_s29 + $0xf0] sm:$0xff]  ;;  %v441_v51 = vmul.f32 %v304_v45, %v304_v45 }
  0x76   : > { %v354_v62 = vadd.f32 %v353_v58, %v290_v53  ;;  %v489_v0 = vadd.f32 %v488_v60, %v426_v55  ;;  %v306_v53 = vld [vmem:[%s1911_s29 + $0xf8] sm:$0xff]  ;;  %v442_v55 = vmul.f32 %v305_v49, %v305_v49 }
  0x78   : > { %v355_v2 = vadd.f32 %v354_v62, %v291_v57  ;;  %v490_v4 = vadd.f32 %v489_v0, %v427_v59  ;;  %v307_v57 = vld [vmem:[%s1911_s29 + $0x100] sm:$0xff]  ;;  %v443_v59 = vmul.f32 %v306_v53, %v306_v53 }
  0x7a   : > { %v356_v6 = vadd.f32 %v355_v2, %v292_v61  ;;  %v491_v8 = vadd.f32 %v490_v4, %v428_v63  ;;  %v308_v61 = vld [vmem:[%s1911_s29 + $0x108] sm:$0xff]  ;;  %v444_v63 = vmul.f32 %v307_v57, %v307_v57 }
  0x7c   : > { %v357_v10 = vadd.f32 %v356_v6, %v293_v1  ;;  %v492_v12 = vadd.f32 %v491_v8, %v429_v3  ;;  %v309_v1 = vld [vmem:[%s1911_s29 + $0x110] sm:$0xff]  ;;  %v445_v3 = vmul.f32 %v308_v61, %v308_v61 }
  0x7e   : > { %v358_v14 = vadd.f32 %v357_v10, %v294_v5  ;;  %v493_v16 = vadd.f32 %v492_v12, %v430_v7  ;;  %v310_v5 = vld [vmem:[%s1911_s29 + $0x118] sm:$0xff]  ;;  %v446_v7 = vmul.f32 %v309_v1, %v309_v1 }
  0x80   : > { %v359_v18 = vadd.f32 %v358_v14, %v295_v9  ;;  %v494_v20 = vadd.f32 %v493_v16, %v431_v11  ;;  %v311_v9 = vld [vmem:[%s1911_s29 + $0x120] sm:$0xff]  ;;  %v447_v11 = vmul.f32 %v310_v5, %v310_v5 }
  0x82   : > { %v360_v22 = vadd.f32 %v359_v18, %v296_v13  ;;  %v495_v24 = vadd.f32 %v494_v20, %v432_v15  ;;  %v312_v13 = vld [vmem:[%s1911_s29 + $0x128] sm:$0xff]  ;;  %v448_v15 = vmul.f32 %v311_v9, %v311_v9 }
  0x84   : > { %v361_v26 = vadd.f32 %v360_v22, %v297_v17  ;;  %v496_v28 = vadd.f32 %v495_v24, %v433_v19  ;;  %v313_v17 = vld [vmem:[%s1911_s29 + $0x130] sm:$0xff]  ;;  %v449_v19 = vmul.f32 %v312_v13, %v312_v13 }
  0x86   : > { %v362_v30 = vadd.f32 %v361_v26, %v298_v21  ;;  %v497_v32 = vadd.f32 %v496_v28, %v434_v23  ;;  %v314_v21 = vld [vmem:[%s1911_s29 + $0x138] sm:$0xff]  ;;  %v450_v23 = vmul.f32 %v313_v17, %v313_v17 }
  0x88   : > { %v363_v34 = vadd.f32 %v362_v30, %v299_v25  ;;  %v498_v36 = vadd.f32 %v497_v32, %v435_v27  ;;  %v315_v25 = vld [vmem:[%s1911_s29 + $0x140] sm:$0xff]  ;;  %v451_v27 = vmul.f32 %v314_v21, %v314_v21 }
  0x8a   : > { %v364_v38 = vadd.f32 %v363_v34, %v300_v29  ;;  %v499_v40 = vadd.f32 %v498_v36, %v436_v31  ;;  %v316_v29 = vld [vmem:[%s1911_s29 + $0x148] sm:$0xff]  ;;  %v452_v31 = vmul.f32 %v315_v25, %v315_v25 }
  0x8c   : > { %v365_v42 = vadd.f32 %v364_v38, %v301_v33  ;;  %v500_v44 = vadd.f32 %v499_v40, %v437_v35  ;;  %v317_v33 = vld [vmem:[%s1911_s29 + $0x150] sm:$0xff]  ;;  %v453_v35 = vmul.f32 %v316_v29, %v316_v29 }
  0x8e   : > { %v366_v46 = vadd.f32 %v365_v42, %v302_v37  ;;  %v501_v48 = vadd.f32 %v500_v44, %v438_v39  ;;  %v318_v37 = vld [vmem:[%s1911_s29 + $0x158] sm:$0xff]  ;;  %v454_v39 = vmul.f32 %v317_v33, %v317_v33 }
  0x90   : > { %v367_v50 = vadd.f32 %v366_v46, %v303_v41  ;;  %v502_v52 = vadd.f32 %v501_v48, %v439_v43  ;;  %v319_v41 = vld [vmem:[%s1911_s29 + $0x160] sm:$0xff]  ;;  %v455_v43 = vmul.f32 %v318_v37, %v318_v37 }
  0x92   : > { %v368_v54 = vadd.f32 %v367_v50, %v304_v45  ;;  %v503_v56 = vadd.f32 %v502_v52, %v440_v47  ;;  %v320_v45 = vld [vmem:[%s1911_s29 + $0x168] sm:$0xff]  ;;  %v456_v47 = vmul.f32 %v319_v41, %v319_v41 }
  0x94   : > { %v369_v58 = vadd.f32 %v368_v54, %v305_v49  ;;  %v504_v60 = vadd.f32 %v503_v56, %v441_v51  ;;  %v321_v49 = vld [vmem:[%s1911_s29 + $0x170] sm:$0xff]  ;;  %v457_v51 = vmul.f32 %v320_v45, %v320_v45 }
  0x96   : > { %v370_v62 = vadd.f32 %v369_v58, %v306_v53  ;;  %v505_v0 = vadd.f32 %v504_v60, %v442_v55  ;;  %v322_v53 = vld [vmem:[%s1911_s29 + $0x178] sm:$0xff]  ;;  %v458_v55 = vmul.f32 %v321_v49, %v321_v49 }
  0x98   : > { %v371_v2 = vadd.f32 %v370_v62, %v307_v57  ;;  %v506_v4 = vadd.f32 %v505_v0, %v443_v59  ;;  %v323_v57 = vld [vmem:[%s1911_s29 + $0x180] sm:$0xff]  ;;  %v459_v59 = vmul.f32 %v322_v53, %v322_v53 }
  0x9a   : > { %v372_v6 = vadd.f32 %v371_v2, %v308_v61  ;;  %v507_v8 = vadd.f32 %v506_v4, %v444_v63  ;;  %v324_v61 = vld [vmem:[%s1911_s29 + $0x188] sm:$0xff]  ;;  %v460_v63 = vmul.f32 %v323_v57, %v323_v57 }
  0x9c   : > { %v373_v10 = vadd.f32 %v372_v6, %v309_v1  ;;  %v508_v12 = vadd.f32 %v507_v8, %v445_v3  ;;  %v325_v1 = vld [vmem:[%s1911_s29 + $0x190] sm:$0xff]  ;;  %v461_v3 = vmul.f32 %v324_v61, %v324_v61 }
  0x9e   : > { %v374_v14 = vadd.f32 %v373_v10, %v310_v5  ;;  %v509_v16 = vadd.f32 %v508_v12, %v446_v7  ;;  %v326_v5 = vld [vmem:[%s1911_s29 + $0x198] sm:$0xff]  ;;  %v462_v7 = vmul.f32 %v325_v1, %v325_v1 }
  0xa0   : > { %v375_v18 = vadd.f32 %v374_v14, %v311_v9  ;;  %v510_v20 = vadd.f32 %v509_v16, %v447_v11  ;;  %v327_v9 = vld [vmem:[%s1911_s29 + $0x1a0] sm:$0xff]  ;;  %v463_v11 = vmul.f32 %v326_v5, %v326_v5 }
  0xa2   : > { %v376_v22 = vadd.f32 %v375_v18, %v312_v13  ;;  %v511_v24 = vadd.f32 %v510_v20, %v448_v15  ;;  %v328_v13 = vld [vmem:[%s1911_s29 + $0x1a8] sm:$0xff]  ;;  %v464_v15 = vmul.f32 %v327_v9, %v327_v9 }
  0xa4   : > { %v377_v26 = vadd.f32 %v376_v22, %v313_v17  ;;  %v512_v28 = vadd.f32 %v511_v24, %v449_v19  ;;  %v329_v17 = vld [vmem:[%s1911_s29 + $0x1b0] sm:$0xff]  ;;  %v465_v19 = vmul.f32 %v328_v13, %v328_v13 }
  0xa6   : > { %v378_v30 = vadd.f32 %v377_v26, %v314_v21  ;;  %v513_v32 = vadd.f32 %v512_v28, %v450_v23  ;;  %v330_v21 = vld [vmem:[%s1911_s29 + $0x1b8] sm:$0xff]  ;;  %v466_v23 = vmul.f32 %v329_v17, %v329_v17 }
  0xa8   : > { %v379_v34 = vadd.f32 %v378_v30, %v315_v25  ;;  %v514_v36 = vadd.f32 %v513_v32, %v451_v27  ;;  %v331_v25 = vld [vmem:[%s1911_s29 + $0x1c0] sm:$0xff]  ;;  %v467_v27 = vmul.f32 %v330_v21, %v330_v21 }
  0xaa   : > { %v380_v38 = vadd.f32 %v379_v34, %v316_v29  ;;  %v515_v40 = vadd.f32 %v514_v36, %v452_v31  ;;  %v332_v29 = vld [vmem:[%s1911_s29 + $0x1c8] sm:$0xff]  ;;  %v468_v31 = vmul.f32 %v331_v25, %v331_v25 }
  0xac   : > { %v381_v42 = vadd.f32 %v380_v38, %v317_v33  ;;  %v516_v44 = vadd.f32 %v515_v40, %v453_v35  ;;  %v333_v33 = vld [vmem:[%s1911_s29 + $0x1d0] sm:$0xff]  ;;  %v469_v35 = vmul.f32 %v332_v29, %v332_v29 }
  0xae   : > { %v382_v46 = vadd.f32 %v381_v42, %v318_v37  ;;  %v517_v48 = vadd.f32 %v516_v44, %v454_v39  ;;  %v334_v37 = vld [vmem:[%s1911_s29 + $0x1d8] sm:$0xff]  ;;  %v470_v39 = vmul.f32 %v333_v33, %v333_v33 }
  0xb0   : > { %v383_v50 = vadd.f32 %v382_v46, %v319_v41  ;;  %v518_v52 = vadd.f32 %v517_v48, %v455_v43  ;;  %v335_v41 = vld [vmem:[%s1911_s29 + $0x1e0] sm:$0xff]  ;;  %v471_v43 = vmul.f32 %v334_v37, %v334_v37 }
  0xb2   : > { %v384_v54 = vadd.f32 %v383_v50, %v320_v45  ;;  %v519_v56 = vadd.f32 %v518_v52, %v456_v47  ;;  %v336_v45 = vld [vmem:[%s1911_s29 + $0x1e8] sm:$0xff]  ;;  %v472_v47 = vmul.f32 %v335_v41, %v335_v41 }
  0xb4   : > { %v385_v58 = vadd.f32 %v384_v54, %v321_v49  ;;  %v520_v60 = vadd.f32 %v519_v56, %v457_v51  ;;  %v337_v49 = vld [vmem:[%s1911_s29 + $0x1f0] sm:$0xff]  ;;  %v473_v51 = vmul.f32 %v336_v45, %v336_v45 }
  0xb6   : > { %v386_v62 = vadd.f32 %v385_v58, %v322_v53  ;;  %v521_v0 = vadd.f32 %v520_v60, %v458_v55  ;;  %v338_v53 = vld [vmem:[%s1911_s29 + $0x1f8] sm:$0xff]  ;;  %v474_v55 = vmul.f32 %v337_v49, %v337_v49 }
  0xb7   : > { %v475_v58 = vmul.f32 %v338_v53, %v338_v53 }
  0xb8   : > { %v387_v2 = vadd.f32 %v386_v62, %v323_v57  ;;  %v522_v4 = vadd.f32 %v521_v0, %v459_v59 }
  0xba   : > { %v388_v6 = vadd.f32 %v387_v2, %v324_v61  ;;  %v523_v8 = vadd.f32 %v522_v4, %v460_v63 }
  0xbc   : > { %v389_v10 = vadd.f32 %v388_v6, %v325_v1  ;;  %v524_v12 = vadd.f32 %v523_v8, %v461_v3 }
  0xbe   : > { %v390_v14 = vadd.f32 %v389_v10, %v326_v5  ;;  %v525_v16 = vadd.f32 %v524_v12, %v462_v7  ;;  %v339_v7 = vld [vmem:[#allocation2] sm:$0x1]  ;;  %v411_v12 = vld [vmem:[#allocation3] sm:$0x1] }
  0xc0   : > { %v391_v18 = vadd.f32 %v390_v14, %v327_v9  ;;  %v526_v20 = vadd.f32 %v525_v16, %v463_v11  ;;  %v552_v16 = vld [vmem:[%s2221_s1 + $0x8] sm:$0xff] (!%p1066_p7) }
  0xc2   : > { %v392_v22 = vadd.f32 %v391_v18, %v328_v13  ;;  %v527_v24 = vadd.f32 %v526_v20, %v464_v15  ;;  %v551_v15 = vld [vmem:[%s2221_s1] sm:$0xff] (!%p1066_p7)  ;;  %v1730_v18 = vmov (!%p1066_p7), 0.0|0.0   ;;  %v554_v20 = vld [vmem:[%s2221_s1 + $0x18] sm:$0xff] (!%p1066_p7) }
  0xc3   : > { %1313 = vmatprep.subr.bf16.mxu0 (!%p1066_p7), %v1730_v18  ;;  %1337 = vmatprep.subr.bf16.mxu1 (!%p1066_p7), %v1730_v18 }
  0xc4   : > { %v393_v26 = vadd.f32 %v392_v22, %v329_v17  ;;  %v528_v28 = vadd.f32 %v527_v24, %v465_v19  ;;  %v553_v17 = vld [vmem:[%s2221_s1 + $0x10] sm:$0xff] (!%p1066_p7)  ;;  %v1998_v19 = vpack.c.bf16 (!%p1066_p7), %v552_v16, %v551_v15  ;;  %v556_v24 = vld [vmem:[%s2221_s1 + $0x28] sm:$0xff] (!%p1066_p7) }
  0xc5   : > { %v1317_v22 = vpack.c.bf16 (!%p1066_p7), %v554_v20, %v553_v17 }
  0xc6   : > { %v394_v30 = vadd.f32 %v393_v26, %v330_v21  ;;  %v529_v32 = vadd.f32 %v528_v28, %v466_v23  ;;  %v1732_v21 = vmov (!%p1066_p7), 0.0   ;;  %1315 = vmatpush3.bf16.msra.mxu0 (!%p1066_p7), %v1998_v19  ;;  %1339 = vmatpush3.bf16.msra.mxu1 (!%p1066_p7), %v1998_v19  ;;  %v555_v23 = vld [vmem:[%s2221_s1 + $0x20] sm:$0xff] (!%p1066_p7)  ;;  %v557_v26 = vld [vmem:[%s2221_s1 + $0x30] sm:$0xff] (!%p1066_p7) }
  0xc7   : > { %1205 = vmatprep.mubr.msk.f32.mxu0 (!%p1066_p7), %vm1731_vm0, %v1732_v21  ;;  %1240 = vmatprep.mubr.msk.f32.mxu1 (!%p1066_p7), %vm1731_vm0, %v1732_v21 }
  0xc8   : > { %v395_v34 = vadd.f32 %v394_v30, %v331_v25  ;;  %v530_v36 = vadd.f32 %v529_v32, %v467_v27  ;;  %1316 = vmatprep.subr.bf16.mxu0 (!%p1066_p7), %v1730_v18  ;;  %1340 = vmatprep.subr.bf16.mxu1 (!%p1066_p7), %v1730_v18  ;;  %v1320_v25 = vpack.c.bf16 (!%p1066_p7), %v556_v24, %v555_v23  ;;  %v558_v27 = vld [vmem:[%s2221_s1 + $0x38] sm:$0xff] (!%p1066_p7)  ;;  %v560_v30 = vld [vmem:[%s2221_s1 + $0x48] sm:$0xff] (!%p1066_p7)  ;;  %v561_v32 = vld [vmem:[%s2221_s1 + $0x50] sm:$0xff] (!%p1066_p7) }
  0xc9   : > { %v1323_v28 = vpack.c.bf16 (!%p1066_p7), %v558_v27, %v557_v26 }
  0xca   : > { %v396_v38 = vadd.f32 %v395_v34, %v332_v29  ;;  %v531_v40 = vadd.f32 %v530_v36, %v468_v31  ;;  %1318 = vmatpush3.bf16.msra.mxu0 (!%p1066_p7), %v1317_v22  ;;  %1342 = vmatpush3.bf16.msra.mxu1 (!%p1066_p7), %v1317_v22  ;;  %v559_v29 = vld [vmem:[%s2221_s1 + $0x40] sm:$0xff] (!%p1066_p7)  ;;  %v564_v36 = vld [vmem:[%s2221_s1 + $0x68] sm:$0xff] (!%p1066_p7) }
  0xcb   : > { %1319 = vmatprep.subr.bf16.mxu0 (!%p1066_p7), %v1730_v18  ;;  %1343 = vmatprep.subr.bf16.mxu1 (!%p1066_p7), %v1730_v18  ;;  %v1326_v31 = vpack.c.bf16 (!%p1066_p7), %v560_v30, %v559_v29 }
  0xcc   : > { %v397_v42 = vadd.f32 %v396_v38, %v333_v33  ;;  %v532_v44 = vadd.f32 %v531_v40, %v469_v35  ;;  %v562_v33 = vld [vmem:[%s2221_s1 + $0x58] sm:$0xff] (!%p1066_p7)  ;;  %v563_v35 = vld [vmem:[%s2221_s1 + $0x60] sm:$0xff] (!%p1066_p7)  ;;  %v565_v38 = vld [vmem:[%s2221_s1 + $0x70] sm:$0xff] (!%p1066_p7) }
  0xcd   : > { %v1329_v34 = vpack.c.bf16 (!%p1066_p7), %v562_v33, %v561_v32 }
  0xce   : > { %v398_v46 = vadd.f32 %v397_v42, %v334_v37  ;;  %v533_v48 = vadd.f32 %v532_v44, %v470_v39  ;;  %1321 = vmatpush3.bf16.msra.mxu0 (!%p1066_p7), %v1320_v25  ;;  %1345 = vmatpush3.bf16.msra.mxu1 (!%p1066_p7), %v1320_v25  ;;  %v1332_v37 = vpack.c.bf16 (!%p1066_p7), %v564_v36, %v563_v35  ;;  %v566_v39 = vld [vmem:[%s2221_s1 + $0x78] sm:$0xff] (!%p1066_p7) }
  0xcf   : > { %1322 = vmatprep.subr.bf16.mxu0 (!%p1066_p7), %v1730_v18  ;;  %1346 = vmatprep.subr.bf16.mxu1 (!%p1066_p7), %v1730_v18  ;;  %v1335_v40 = vpack.c.bf16 (!%p1066_p7), %v566_v39, %v565_v38 }
  0xd0   : > { %v399_v50 = vadd.f32 %v398_v46, %v335_v41  ;;  %v534_v52 = vadd.f32 %v533_v48, %v471_v43 }
  0xd2   : > { %v400_v54 = vadd.f32 %v399_v50, %v336_v45  ;;  %v535_v56 = vadd.f32 %v534_v52, %v472_v47  ;;  %1324 = vmatpush3.bf16.msra.mxu0 (!%p1066_p7), %v1323_v28  ;;  %1348 = vmatpush3.bf16.msra.mxu1 (!%p1066_p7), %v1323_v28 }
  0xd3   : > { %1325 = vmatprep.subr.bf16.mxu0 (!%p1066_p7), %v1730_v18  ;;  %1349 = vmatprep.subr.bf16.mxu1 (!%p1066_p7), %v1730_v18 }
  0xd4   : > { %v401_v57 = vadd.f32 %v400_v54, %v337_v49  ;;  %v536_v59 = vadd.f32 %v535_v56, %v473_v51  ;;  %v910_v56 = vld [vmem:[%s2222_s2] sm:$0x1] (!%p1066_p7) }
  0xd6   : > { %v402_v60 = vadd.f32 %v401_v57, %v338_v53  ;;  %v537_v61 = vadd.f32 %v536_v59, %v474_v55  ;;  %1327 = vmatpush3.bf16.msra.mxu0 (!%p1066_p7), %v1326_v31  ;;  %1351 = vmatpush3.bf16.msra.mxu1 (!%p1066_p7), %v1326_v31 }
  0xd7   : > { %1328 = vmatprep.subr.bf16.mxu0 (!%p1066_p7), %v1730_v18  ;;  %1352 = vmatprep.subr.bf16.mxu1 (!%p1066_p7), %v1730_v18 }
  0xd8   : > { %v403_v62 = vrot.slane %v402_v60, 4  ;;  %v538_v63 = vadd.f32 %v537_v61, %v475_v58 }
  0xda   : > { %v404_v0 = vadd.f32 %v403_v62, %v402_v60  ;;  %v539_v1 = vrot.slane %v538_v63, 4  ;;  %1330 = vmatpush3.bf16.msra.mxu0 (!%p1066_p7), %v1329_v34  ;;  %1354 = vmatpush3.bf16.msra.mxu1 (!%p1066_p7), %v1329_v34  ;;  %v913_v60 = vld [vmem:[%s2223_s3] sm:$0x1] (!%p1066_p7) }
  0xdb   : > { %1331 = vmatprep.subr.bf16.mxu0 (!%p1066_p7), %v1730_v18  ;;  %1355 = vmatprep.subr.bf16.mxu1 (!%p1066_p7), %v1730_v18 }
  0xdc   : > { %v405_v2 = vrot.slane %v404_v0, 2  ;;  %v540_v3 = vadd.f32 %v539_v1, %v538_v63 }
  0xde   : > { %v406_v4 = vadd.f32 %v405_v2, %v404_v0  ;;  %v541_v5 = vrot.slane %v540_v3, 2  ;;  %1333 = vmatpush3.bf16.msra.mxu0 (!%p1066_p7), %v1332_v37  ;;  %1357 = vmatpush3.bf16.msra.mxu1 (!%p1066_p7), %v1332_v37 }
  0xdf   : > { %1334 = vmatprep.subr.bf16.mxu0 (!%p1066_p7), %v1730_v18  ;;  %1358 = vmatprep.subr.bf16.mxu1 (!%p1066_p7), %v1730_v18 }
  0xe0   : > { %v407_v6 = vrot.slane %v406_v4, 1  ;;  %v542_v8 = vadd.f32 %v541_v5, %v540_v3 }
  0xe2   : > { %v408_v9 = vadd.f32 %v407_v6, %v406_v4  ;;  %v543_v10 = vrot.slane %v542_v8, 1  ;;  %550 = sbr.rel (%p1066_p7) target bundleno = 688 (0x2b0), region = 48  ;;  %1336 = vmatpush3.bf16.msra.mxu0 (!%p1066_p7), %v1335_v40  ;;  %1360 = vmatpush3.bf16.msra.mxu1 (!%p1066_p7), %v1335_v40 }
  0xe3   : > { %1361 = vmatprep.subr.bf16.mxu0 (!%p1066_p7), %v1730_v18  ;;  %1393 = vmatprep.subr.bf16.mxu1 (!%p1066_p7), %v1730_v18 }
  0xe4   : > { %v409_v11 = vadd.f32 %v408_v9, %v339_v7  ;;  %v544_v13 = vadd.f32 %v543_v10, %v542_v8 }
  0xe6   : > { %410 = vst [vmem:[#allocation2] sm:$0x1] %v409_v11  ;;  %v545_v14 = vadd.f32 %v544_v13, %v411_v12 }
  0xe8   : > { %546 = vst [vmem:[#allocation3] sm:$0x1] %v545_v14 }
  0xed   : > { %v567_v41 = vld [vmem:[#allocation2] sm:$0x1] }
  0xee   : > { %1206 = vmatmul.mubr.f32.vlgmr.msra.gmra.mrb[0].mxu0 %v567_v41 }
  0xef   : > { %v638_v42 = vld [vmem:[#allocation3] sm:$0x1]  ;;  %1275 = vmatprep.mubr.msk.f32.mxu0 %vm1731_vm0, %v1732_v21  ;;  %1364 = vmatpush3.bf16.xpose.msk.msra.mxu0 %vm2064_vm2, %v1998_v19 }
  0xf0   : > { %1241 = vmatmul.mubr.f32.vlgmr.msra.gmra.mrb[0].mxu1 %v638_v42  ;;  %1365 = vmatprep.subr.bf16.mxu0 %v1730_v18 }
  0xf1   : > { %1310 = vmatprep.mubr.msk.f32.mxu1 %vm1731_vm0, %v1732_v21  ;;  %1396 = vmatpush3.bf16.xpose.msk.msra.mxu1 %vm2064_vm2, %v1998_v19 }
  0xf2   : > { %1397 = vmatprep.subr.bf16.mxu1 %v1730_v18 }
  0xf7   : > { %1368 = vmatpush3.bf16.xpose.msk.msra.mxu0 %vm2064_vm2, %v1317_v22 }
  0xf8   : > { %1369 = vmatprep.subr.bf16.mxu0 %v1730_v18 }
  0xf9   : > { %1400 = vmatpush3.bf16.xpose.msk.msra.mxu1 %vm2064_vm2, %v1317_v22 }
  0xfa   : > { %1401 = vmatprep.subr.bf16.mxu1 %v1730_v18 }
  0xff   : > { %1372 = vmatpush3.bf16.xpose.msk.msra.mxu0 %vm2064_vm2, %v1320_v25 }
 0x100   : > { %1373 = vmatprep.subr.bf16.mxu0 %v1730_v18 }
 0x101   : > { %1404 = vmatpush3.bf16.xpose.msk.msra.mxu1 %vm2064_vm2, %v1320_v25 }
 0x102   : > { %1405 = vmatprep.subr.bf16.mxu1 %v1730_v18 }
 0x107   : > { %1376 = vmatpush3.bf16.xpose.msk.msra.mxu0 %vm2064_vm2, %v1323_v28 }
 0x108   : > { %1377 = vmatprep.subr.bf16.mxu0 %v1730_v18 }
 0x109   : > { %1408 = vmatpush3.bf16.xpose.msk.msra.mxu1 %vm2064_vm2, %v1323_v28 }
 0x10a   : > { %1409 = vmatprep.subr.bf16.mxu1 %v1730_v18 }
 0x10f   : > { %1380 = vmatpush3.bf16.xpose.msk.msra.mxu0 %vm2064_vm2, %v1326_v31 }
 0x110   : > { %1381 = vmatprep.subr.bf16.mxu0 %v1730_v18 }
 0x111   : > { %1412 = vmatpush3.bf16.xpose.msk.msra.mxu1 %vm2064_vm2, %v1326_v31 }
 0x112   : > { %1413 = vmatprep.subr.bf16.mxu1 %v1730_v18 }
 0x117   : > { %1384 = vmatpush3.bf16.xpose.msk.msra.mxu0 %vm2064_vm2, %v1329_v34 }
 0x118   : > { %1385 = vmatprep.subr.bf16.mxu0 %v1730_v18 }
 0x119   : > { %1416 = vmatpush3.bf16.xpose.msk.msra.mxu1 %vm2064_vm2, %v1329_v34 }
 0x11a   : > { %1417 = vmatprep.subr.bf16.mxu1 %v1730_v18 }
 0x11f   : > { %1388 = vmatpush3.bf16.xpose.msk.msra.mxu0 %vm2064_vm2, %v1332_v37 }
 0x120   : > { %1389 = vmatprep.subr.bf16.mxu0 %v1730_v18 }
 0x121   : > { %1420 = vmatpush3.bf16.xpose.msk.msra.mxu1 %vm2064_vm2, %v1332_v37 }
 0x122   : > { %1421 = vmatprep.subr.bf16.mxu1 %v1730_v18 }
 0x127   : > { %1392 = vmatpush3.bf16.xpose.msk.msra.mxu0 %vm2064_vm2, %v1335_v40 }
 0x129   : > { %1424 = vmatpush3.bf16.xpose.msk.msra.mxu1 %vm2064_vm2, %v1335_v40 }
 0x1c1   : > { %v634_v44 = vpop.f32.mrb[0].mxu0 }
 0x1c2   : > { %v709_v46 = vmul.f32 0.00012207031, %v634_v44  ;;  %v1207_v47 = vpop.f32.mrb[1].mxu0 }
 0x1c3   : > { %v705_v45 = vpop.f32.mrb[0].mxu1 }
 0x1c4   : > { %v710_v48 = vmul.f32 0.00012207031, %v705_v45  ;;  %v1242_v49 = vpop.f32.mrb[1].mxu1  ;;  %v711_v50 = vmul.f32 %v709_v46, %v709_v46  ;;  %1276 = vmatmul.mubr.msk.f32.vlgmr.msra.gmra.mrb[2].mxu0 %vm715_vm1, %v709_v46 }
 0x1c6   : > { %v712_v51 = vsub.f32 %v710_v48, %v711_v50 }
 0x1c8   : > { %v713_v52 = vadd.f32 1e-05, %v712_v51 }
 0x1ca   : > { %1538 = vrsqrt.f32 %v713_v52 }
 0x1d4   : > { %v1539_v53 = vpop.eup %1538 }
 0x1d5   : > { %1311 = vmatmul.mubr.msk.f32.vlgmr.msra.gmra.mrb[2].mxu1 %vm715_vm1, %v1539_v53 }
 0x297   : > { %v833_v54 = vpop.f32.mrb[2].mxu0 }
 0x298   : > { %v1277_v55 = vpop.f32.mrb[3].mxu0 }
 0x2a8   : > { %v906_v57 = vpop.f32.mrb[2].mxu1 }
 0x2a9   : > { %v911_v58 = vmul.f32 %v910_v56, %v906_v57  ;;  %v1312_v59 = vpop.f32.mrb[3].mxu1 }
 0x2ab   : > { %912 = vst [vmem:[%s261_s23] sm:$0x1] %v911_v58  ;;  %v914_v61 = vmul.f32 %v911_v58, %v833_v54 }
 0x2ad   : > { %v915_v62 = vsub.f32 %v913_v60, %v914_v61 }
 0x2af   : > { %916 = vst [vmem:[%s267_s6] sm:$0x1] %v915_v62 }
 0x2b0 PF: > { %s1101_s12 = sshll.u32 %s1712_s25, 4  ;;  %s934_s5 = sshll.u32 %s261_s23, 4  ;;  %s935_s5 = int_to_ptr.vmem [resolvable:$true] %s934_s5 }
 0x2b1   : > { %s2134_s30 = scalar_lea.hbm %s2224_s4, %s1101_s12  ;;  %s918_s9 = scalar_lea.sflag [#allocation6], %s1918_s11 }
 0x2b2   : > { %s1570_s24 = scalar_lea.vmem %s935_s5, 16  ;;  %p2245_p4 = scmp.ne.s32.totalorder %s2238_s15, 0 }
 0x2b3   : > { %p1571_p2 = scmp.ne.s32.totalorder %s935_s5, %s1570_s24  ;;  %s1733_s10 = smov [#allocation7]  }
 0x2b4   : > { %s1574_s17 = sshll.u32 %s1733_s10, 4  ;;  %s1575_s17 = int_to_ptr.vmem [resolvable:$false] %s1574_s17 }
 0x2b5   : > { %p1572_p0 = pnand %p1571_p2, %p2245_p4  ;;  %s1576_s13 = scalar_lea.vmem %s1575_s17, 32 }
 0x2b6   : > { %p1577_p5 = scmp.lt.s32.totalorder %s935_s5, %s1575_s17  ;;  %p1578_p6 = scmp.lt.s32.totalorder %s1576_s13, %s1570_s24 }
 0x2b7   : > { %p1573_p1 = pneg %p1572_p0 }
 0x2b8   : > { %p1579_p9 = por %p1578_p6, %p1577_p5 }
 0x2ba   : > { %p1580_p10 = pnand %p1579_p9, %p1573_p1 }
 0x2bc   : > { %1583 = shalt.err (!%p1580_p10)
}
 0x2bd   : > { %s1584_s23 = scalar_lea.hbm %s2134_s30, 16  ;;  %s1588_s8 = scalar_lea.hbm %s2224_s4, 32 }
 0x2be   : > { %p1585_p11 = scmp.ne.s32.totalorder %s2134_s30, %s1584_s23  ;;  %p1589_p13 = scmp.lt.u32.totalorder %s2134_s30, %s2224_s4 }
 0x2bf   : > { %p1590_p12 = scmp.lt.u32.totalorder %s1588_s8, %s1584_s23  ;;  %p1592_p2 = scmp.lt.u32.totalorder %s1584_s23, %s2134_s30 }
 0x2c0   : > { %p1586_p3 = pnand %p1585_p11, %p2245_p4 }
 0x2c1   : > { %p1591_p7 = por %p1590_p12, %p1589_p13 }
 0x2c2   : > { %p1587_p8 = pneg %p1586_p3 }
 0x2c3   : > { %p1593_p0 = por %p1592_p2, %p1591_p7 }
 0x2c5   : > { %p1594_p1 = pnand %p1593_p0, %p1587_p8 }
 0x2c7   : > { %1597 = shalt.err (!%p1594_p1)
}
 0x2c8   : > { %1427 = dma.vmem_to_hbm [thread:$0]  (%p2245_p4), %s935_s5, 16, %s2134_s30, %s918_s9  }
 0x2c9   : > { %s2246_s13 = sld [smem:[#allocation18_spill]]  ;;  %s947_s29 = sshll.u32 %s267_s6, 4  ;;  %s948_s29 = int_to_ptr.vmem [resolvable:$true] %s947_s29 }
 0x2ca   : > { %s922_s23 = scalar_lea.sflag [#allocation9], %s1918_s11  ;;  %s1598_s8 = scalar_lea.vmem %s948_s29, 16 }
 0x2cb   : > { %p1599_p5 = scmp.ne.s32.totalorder %s948_s29, %s1598_s8  ;;  %s1734_s7 = smov [#allocation8]  }
 0x2cc   : > { %s1602_s10 = sshll.u32 %s1734_s7, 4  ;;  %s1603_s10 = int_to_ptr.vmem [resolvable:$false] %s1602_s10 }
 0x2cd   : > { %p1600_p6 = pnand %p1599_p5, %p2245_p4  ;;  %s1604_s0 = scalar_lea.vmem %s1603_s10, 32 }
 0x2ce   : > { %p1605_p10 = scmp.lt.s32.totalorder %s948_s29, %s1603_s10  ;;  %p1606_p11 = scmp.lt.s32.totalorder %s1604_s0, %s1598_s8 }
 0x2cf   : > { %s2161_s14 = scalar_lea.hbm %s2246_s13, %s1101_s12  ;;  %p1601_p9 = pneg %p1600_p6 }
 0x2d0   : > { %p1607_p3 = por %p1606_p11, %p1605_p10 }
 0x2d2   : > { %p1608_p8 = pnand %p1607_p3, %p1601_p9 }
 0x2d4   : > { %1611 = shalt.err (!%p1608_p8)
}
 0x2d5   : > { %s1612_s25 = scalar_lea.hbm %s2161_s14, 16  ;;  %s1616_s12 = scalar_lea.hbm %s2246_s13, 32 }
 0x2d6   : > { %p1613_p13 = scmp.ne.s32.totalorder %s2161_s14, %s1612_s25  ;;  %p1617_p2 = scmp.lt.u32.totalorder %s2161_s14, %s2246_s13 }
 0x2d7   : > { %p1618_p0 = scmp.lt.u32.totalorder %s1616_s12, %s1612_s25  ;;  %p1620_p5 = scmp.lt.u32.totalorder %s1612_s25, %s2161_s14 }
 0x2d8   : > { %p1614_p12 = pnand %p1613_p13, %p2245_p4 }
 0x2d9   : > { %p1619_p1 = por %p1618_p0, %p1617_p2 }
 0x2da   : > { %p1615_p7 = pneg %p1614_p12 }
 0x2db   : > { %p1621_p6 = por %p1620_p5, %p1619_p1 }
 0x2dd   : > { %p1622_p9 = pnand %p1621_p6, %p1615_p7 }
 0x2df   : > { %1625 = shalt.err (!%p1622_p9)
}
 0x2e0   : > { %1428 = dma.vmem_to_hbm [thread:$0]  (%p2245_p4), %s948_s29, 16, %s2161_s14, %s922_s23  }
 0x2e1 PF: > { %p1443_p10 = scmp.ge.s32.totalorder %s1724_s28, 2  ;;  %s959_s0 = sand.u32 1, %s1684_s18  }
 0x2e2   : > { %p2247_p11 = scmp.ne.s32.totalorder %s2240_s21, 0  ;;  %s960_s9 = scalar_lea.sflag [#allocation6], %s959_s0 }
 0x2e4   : > { %p1436_p3 = pnand %p1443_p10, %p2247_p11 }
 0x2e6   : > { %1675 = dma.done.wait (!%p1436_p3), %s960_s9, 16  }
 0x2e7   : > { %1677 = vsyncadd (!%p1436_p3), %s960_s9, 4294967280  ;;  %s968_s24 = scalar_lea.sflag [#allocation9], %s959_s0 }
 0x2e8   : > { %1679 = dma.done.wait (!%p1436_p3), %s968_s24, 16  }
 0x2e9   : > { %1681 = vsyncadd (!%p1436_p3), %s968_s24, 4294967280  ;;  %s25_s28 = sadd.s32 1, %s1724_s28   ;;  %s2248_s15 = sld [smem:[#allocation13_spill]] }
 0x2ea   : > { %p22_p8 = scmp.ge.s32.totalorder %s25_s28, 6   ;;  %s2249_s23 = sld [smem:[#allocation16_spill]] }
 0x2eb   : > { %s2250_s17 = sld [smem:[#allocation14_spill]]  ;;  %s2251_s14 = sld [smem:[#allocation15_spill]] }
 0x2ec   : > { %s2252_s18 = smov %s1688_s19  ;;  %s2253_s19 = smov %s1692_s20 }
 0x2ed   : > { %s2254_s20 = smov %s1852_s16  ;;  %s2255_s21 = smov %s1700_s22 }
 0x2ee   : > { %s2257_s24 = smov %s1716_s26  ;;  %s2258_s25 = smov %s1720_s27 }
 0x2ef   : > { %s2256_s22 = smov %s2248_s15  ;;  %24 = sbr.rel (!%p22_p8) target bundleno = 14 (0xe), region = 106 }
 0x2f1   : > { %s2259_s26 = smov %s2250_s17  ;;  %s2260_s27 = smov %s2251_s14 }
 0x2f6   :  { %972 = vsyncpa [#allocation5], 1 }
 0x2f7   :  { %974 = vsyncpa [#allocation5 + $0x1], 1 }
 0x2f8   :  { %975 = vsyncpa [#allocation6], 1 }
 0x2f9   :  { %977 = vsyncpa [#allocation6 + $0x1], 1 }
 0x2fa   :  { %978 = vsyncpa [#allocation9], 1 }
 0x2fb   :  { %980 = vsyncpa [#allocation9 + $0x1], 1 }

</bundles_post_ra>
